<compile_context>
chip_gen: v5e
topology: v5e:2x2
jax: 0.10.0
libtpu: 0.0.40
codegen_flags: <defaults>
</compile_context>

<pallas_src>
import functools

import numpy as np
import jax
import jax.numpy as jnp
from jax.experimental import pallas as pl
from jax.experimental.pallas import tpu as pltpu

_LANE = 128
_SUBLANE = 8
_MAX_BATCH_TILE = 128            # per-grid-step batch tile for large batches
_SINGLE_BUFFER_BYTES = 4 << 20   # constants above this are single-buffered


def _round_up(x, m):
    return ((x + m - 1) // m) * m


def _batch_tiling(b):
    """Returns (batch_tile, padded_batch).  Batch padded to a multiple of 8 so
    the (3, tb, Vp) blocks are sublane-dense; single grid step for small B
    (1 TC on v5e/v6e); larger batches tile at 128/step so dimension_semantics
    =("parallel",) can shard across v7x's two TensorCores."""
    if b <= _MAX_BATCH_TILE:
        bp = _round_up(b, _SUBLANE)
        return bp, bp
    bp = _round_up(b, _MAX_BATCH_TILE)
    return _MAX_BATCH_TILE, bp


def _sigmoid(x):
    # tanh-based logistic: numerically stable and maps to the EUP.
    return 0.5 * (jnp.tanh(0.5 * x) + 1.0)


def _const_spec(block_shape, nbytes):
    """BlockSpec for an input that is constant across the grid.

    Large constants (L^T / gather matrix of a subdivided mesh) are
    single-buffered so the block is not allocated twice in VMEM; tiny
    constants keep the default double-buffering.
    """
    index_map = lambda *_: (0,) * len(block_shape)
    if nbytes >= _SINGLE_BUFFER_BYTES:
        return pl.BlockSpec(block_shape, index_map,
                            pipeline_mode=pl.Buffered(1))
    return pl.BlockSpec(block_shape, index_map)


# ---------------------------------------------------------------------------
# Fused kernel: deformation + Laplacian loss + Flatten loss.
# Layout: coordinate-major.  Rows of the 2-D views are (coordinate, batch),
# lanes are vertex / edge indices (padded to multiples of 128).
# ---------------------------------------------------------------------------
def mesh_fused_kernel(base_ref, sign_ref, disp_ref, cen_ref, lt_ref, g_ref,
                      mask_ref, v_ref, lap_ref, flat_ref):
    # base/sign: (3, Vp)      constant, broadcast over the batch in-kernel
    # disp:      (3, tb, Vp)  displacement (coordinate-major)
    # cen:       (3, tb, 1)   center
    # lt:        (Vp, Vp)     padded, pre-transposed Laplacian L^T
    # g:         (Vp, 4*Ep)   one-hot edge-vertex gather matrices [v0|v1|v2|v3]
    # mask:      (1, Ep)      1.0 for real edges, 0.0 for padded edge lanes
    # v_ref:     (3, tb, Vp)  deformed vertices
    # lap_ref:   (tb, 1)      per-batch Laplacian sum of squares
    # flat_ref:  (tb, 1)      per-batch flatten sum
    _, tb, vp = disp_ref.shape
    ep = g_ref.shape[1] // 4
    eps = 1e-6

    # ---- vertex deformation -------------------------------------------------
    base = base_ref[...][:, None, :]                      # (3, 1, Vp)
    sgn = sign_ref[...][:, None, :]                       # (3, 1, Vp)
    cen = jnp.tanh(cen_ref[...])                          # (3, tb, 1)
    v = _sigmoid(base + disp_ref[...]) * sgn              # (3, tb, Vp)
    v = jnp.maximum(v, 0.0) * (1.0 - cen) - jnp.maximum(-v, 0.0) * (cen + 1.0)
    v = v + cen
    v_ref[...] = v

    # Local value `v` feeds the matmuls directly (no VMEM round trip).
    v2 = v.reshape(3 * tb, vp)          # rows = (coord, batch), lanes = vertex

    # ---- Laplacian loss: y = x @ L^T, per-batch sum of squares -------------
    y = jnp.dot(v2, lt_ref[...], preferred_element_type=jnp.float32)
    row_sq = jnp.sum(y * y, axis=1, keepdims=True)        # (3*tb, 1)
    lap_ref[...] = (row_sq[0 * tb:1 * tb]
                    + row_sq[1 * tb:2 * tb]
                    + row_sq[2 * tb:3 * tb])               # (tb, 1)

    # ---- FlattenLoss: one-hot gather as an MXU matmul, then dihedral math ---
    gath = jnp.dot(v2, g_ref[...], preferred_element_type=jnp.float32)
    gath = gath.reshape(3, tb, 4 * ep)                     # [coord, batch, ·]
    v0 = gath[:, :, 0 * ep:1 * ep]
    v1 = gath[:, :, 1 * ep:2 * ep]
    v2e = gath[:, :, 2 * ep:3 * ep]
    v3 = gath[:, :, 3 * ep:4 * ep]

    def dot3(x, y3):                    # contract coordinate axis -> (tb, ep)
        return x[0] * y3[0] + x[1] * y3[1] + x[2] * y3[2]

    a = v1 - v0                          # shared edge vector (deduped a1/a2)
    b1 = v2e - v0
    b2 = v3 - v0
    al2 = dot3(a, a)
    al1 = jnp.sqrt(al2 + eps)
    b1l1 = jnp.sqrt(dot3(b1, b1) + eps)
    b2l1 = jnp.sqrt(dot3(b2, b2) + eps)
    ab1 = dot3(a, b1)
    ab2 = dot3(a, b2)
    cos1 = ab1 / (al1 * b1l1 + eps)
    cos2 = ab2 / (al1 * b2l1 + eps)
    sin1 = jnp.sqrt(jnp.maximum(1.0 - cos1 * cos1, 0.0))   # clamped vs NaN
    sin2 = jnp.sqrt(jnp.maximum(1.0 - cos2 * cos2, 0.0))
    cb1 = b1 - a * (ab1 / (al2 + eps))[None]
    cb2 = b2 - a * (ab2 / (al2 + eps))[None]
    cos = dot3(cb1, cb2) / (b1l1 * sin1 * b2l1 * sin2 + eps)   # (tb, ep)
    per_edge = (cos + 1.0) * (cos + 1.0) * mask_ref[...]       # mask pad lanes
    flat_ref[...] = jnp.sum(per_edge, axis=1, keepdims=True)   # (tb, 1)


# ---------------------------------------------------------------------------
# Forward wrapper (mirrors MeshModel.forward).
# ---------------------------------------------------------------------------
@functools.partial(jax.jit, static_argnames=("num_views",))
def mesh_model_forward(displace, center, texture, faces,
                       base3, sign3, lt_pad, g_all, edge_mask, *, num_views):
    B, V, _ = displace.shape
    Vp = lt_pad.shape[0]
    Ep4 = g_all.shape[1]
    Ep = Ep4 // 4

    tb, bp = _batch_tiling(B)
    R = 3 * bp

    # Coordinate-major layout [coordinate, batch, vertex-lane]; batch padded
    # to a multiple of 8, vertices padded to a multiple of 128 (lane-dense).
    disp_p = jnp.pad(jnp.transpose(displace, (2, 0, 1)),
                     ((0, 0), (0, bp - B), (0, Vp - V)))
    cen_p = jnp.pad(jnp.transpose(center, (2, 0, 1)),
                    ((0, 0), (0, bp - B), (0, 0)))

    cost = pl.CostEstimate(
        flops=2 * R * Vp * (Vp + Ep4) + 40 * R * Vp + 80 * bp * Ep,
        transcendentals=2 * R * Vp + R + 6 * bp * Ep,
        bytes_accessed=4 * (2 * R * Vp + 2 * R + 6 * Vp
                            + Vp * (Vp + Ep4) + Ep + 2 * bp),
    )

    v_out, lap_pb, flat_pb = pl.pallas_call(
        mesh_fused_kernel,
        out_shape=(jax.ShapeDtypeStruct((3, bp, Vp), jnp.float32),
                   jax.ShapeDtypeStruct((bp, 1), jnp.float32),
                   jax.ShapeDtypeStruct((bp, 1), jnp.float32)),
        grid_spec=pltpu.PrefetchScalarGridSpec(
            num_scalar_prefetch=0,
            grid=(bp // tb,),
            in_specs=[
                _const_spec((3, Vp), 3 * Vp * 4),                 # base
                _const_spec((3, Vp), 3 * Vp * 4),                 # sign
                pl.BlockSpec((3, tb, Vp), lambda i: (0, i, 0)),   # displace
                pl.BlockSpec((3, tb, 1), lambda i: (0, i, 0)),    # center
                _const_spec((Vp, Vp), Vp * Vp * 4),               # L^T
                _const_spec((Vp, Ep4), Vp * Ep4 * 4),             # gather mats
                _const_spec((1, Ep), Ep * 4),                     # edge mask
            ],
            out_specs=(
                pl.BlockSpec((3, tb, Vp), lambda i: (0, i, 0)),   # vertices
                pl.BlockSpec((tb, 1), lambda i: (i, 0)),          # lap sumsq
                pl.BlockSpec((tb, 1), lambda i: (i, 0)),          # flatten sum
            ),
        ),
        compiler_params=pltpu.CompilerParams(
            dimension_semantics=("parallel",)),
        cost_estimate=cost,
    )(base3, sign3, disp_p, cen_p, lt_pad, g_all, edge_mask)

    laplacian_loss = jnp.mean(lap_pb[:B, 0])
    flatten_loss = jnp.mean(flat_pb[:B, 0])

    verts = jnp.transpose(v_out[:, :B, :V], (1, 2, 0))       # (B, V, 3)

    # torch: x.repeat(1, numViews, 1).reshape(numViews*numBatch, -1, 3)
    #        == repeat along the batch axis.
    mesh_vertices = jnp.repeat(verts, num_views, axis=0)
    mesh_faces = jnp.tile(faces[None], (num_views * B, 1, 1))
    mesh_textures = jnp.repeat(texture, num_views, axis=0)
    # TODO(synk): wrapping these into an sr.Mesh(texture_type='vertex') object
    # is external SoftRas code with no Pallas/JAX equivalent.
    return mesh_vertices, mesh_faces, mesh_textures, laplacian_loss, flatten_loss


# ---------------------------------------------------------------------------
# Host-side (init-time) mesh constants — mirrors the __init__ of the losses.
# ---------------------------------------------------------------------------
def build_icosahedron():
    phi = (1.0 + 5.0 ** 0.5) / 2.0
    verts = np.array([
        [-1, phi, 0], [1, phi, 0], [-1, -phi, 0], [1, -phi, 0],
        [0, -1, phi], [0, 1, phi], [0, -1, -phi], [0, 1, -phi],
        [phi, 0, -1], [phi, 0, 1], [-phi, 0, -1], [-phi, 0, 1],
    ], dtype=np.float64)
    verts /= np.linalg.norm(verts, axis=1, keepdims=True)
    verts *= 0.9  # keep |coord| < 1 so log(|v|/(1-|v|)) stays finite

    def rot(a, i, j):
        r = np.eye(3)
        c, s = np.cos(a), np.sin(a)
        r[i, i] = c
        r[j, j] = c
        r[i, j] = -s
        r[j, i] = s
        return r

    # Generic rotation: avoids exact-zero coordinates (sign/log edge cases).
    rmat = rot(0.31, 0, 1) @ rot(0.47, 1, 2) @ rot(0.23, 0, 2)
    verts = verts @ rmat.T

    faces = np.array([
        [0, 11, 5], [0, 5, 1], [0, 1, 7], [0, 7, 10], [0, 10, 11],
        [1, 5, 9], [5, 11, 4], [11, 10, 2], [10, 7, 6], [7, 1, 8],
        [3, 9, 4], [3, 4, 2], [3, 2, 6], [3, 6, 8], [3, 8, 9],
        [4, 9, 5], [2, 4, 11], [6, 2, 10], [8, 6, 7], [9, 8, 1],
    ], dtype=np.int32)
    return verts.astype(np.float32), faces


def build_laplacian(faces, nv):
    lap = np.zeros((nv, nv), dtype=np.float32)
    f = faces
    lap[f[:, 0], f[:, 1]] = -1
    lap[f[:, 1], f[:, 0]] = -1
    lap[f[:, 1], f[:, 2]] = -1
    lap[f[:, 2], f[:, 1]] = -1
    lap[f[:, 2], f[:, 0]] = -1
    lap[f[:, 0], f[:, 2]] = -1
    r, c = np.diag_indices(nv)
    lap[r, c] = -lap.sum(1)
    for i in range(nv):
        lap[i, :] /= lap[i, i]
    return lap


def build_flatten_indices(faces):
    f = faces
    edges = sorted(set(tuple(v) for v in np.sort(
        np.concatenate((f[:, 0:2], f[:, 1:3]), axis=0))))
    v0s = np.array([e[0] for e in edges], np.int32)
    v1s = np.array([e[1] for e in edges], np.int32)
    v2s, v3s = [], []
    for v0, v1 in zip(v0s, v1s):
        count = 0
        for face in f:
            if v0 in face and v1 in face:
                v = np.copy(face)
                v = v[v != v0]
                v = v[v != v1]
                if count == 0:
                    v2s.append(int(v[0]))
                    count += 1
                else:
                    v3s.append(int(v[0]))
    return np.stack([v0s, v1s,
                     np.array(v2s, np.int32),
                     np.array(v3s, np.int32)], axis=0).astype(np.int32)


# ---------------------------------------------------------------------------
# Pure-JAX reference (mirrors the torch forward exactly).
# ---------------------------------------------------------------------------
def reference_forward(template, lap, edge_idx, displace, center, num_views):
    base = jnp.log(jnp.abs(template) / (1.0 - jnp.abs(template)))  # (V,3)
    centroid = jnp.tanh(center)                                    # (B,1,3)
    sgn = jnp.sign(template)
    v = jax.nn.sigmoid(base[None] + displace) * sgn[None]
    v = jnp.maximum(v, 0.0) * (1.0 - centroid) - jnp.maximum(-v, 0.0) * (centroid + 1.0)
    v = v + centroid                                               # (B,V,3)

    lx = jnp.einsum('ij,bjc->bic', lap, v)
    lap_loss = jnp.mean(jnp.sum(lx * lx, axis=(1, 2)))

    eps = 1e-6
    v0 = v[:, edge_idx[0]]
    v1 = v[:, edge_idx[1]]
    v2 = v[:, edge_idx[2]]
    v3 = v[:, edge_idx[3]]
    a1 = v1 - v0
    b1 = v2 - v0
    a1l2 = jnp.sum(a1 * a1, -1)
    b1l2 = jnp.sum(b1 * b1, -1)
    a1l1 = jnp.sqrt(a1l2 + eps)
    b1l1 = jnp.sqrt(b1l2 + eps)
    ab1 = jnp.sum(a1 * b1, -1)
    cos1 = ab1 / (a1l1 * b1l1 + eps)
    sin1 = jnp.sqrt(1.0 - cos1 * cos1)
    c1 = a1 * (ab1 / (a1l2 + eps))[..., None]
    cb1 = b1 - c1
    cb1l1 = b1l1 * sin1
    a2 = v1 - v0
    b2 = v3 - v0
    a2l2 = jnp.sum(a2 * a2, -1)
    b2l2 = jnp.sum(b2 * b2, -1)
    a2l1 = jnp.sqrt(a2l2 + eps)
    b2l1 = jnp.sqrt(b2l2 + eps)
    ab2 = jnp.sum(a2 * b2, -1)
    cos2 = ab2 / (a2l1 * b2l1 + eps)
    sin2 = jnp.sqrt(1.0 - cos2 * cos2)
    c2 = a2 * (ab2 / (a2l2 + eps))[..., None]
    cb2 = b2 - c2
    cb2l1 = b2l1 * sin2
    cos = jnp.sum(cb1 * cb2, -1) / (cb1l1 * cb2l1 + eps)
    flat_loss = jnp.mean(jnp.sum((cos + 1.0) ** 2, axis=1))

    mesh_vertices = jnp.repeat(v, num_views, axis=0)
    return mesh_vertices, lap_loss, flat_loss


if __name__ == "__main__":
    template_np, faces_np = build_icosahedron()
    V = template_np.shape[0]           # 12
    F = faces_np.shape[0]              # 20
    lap_np = build_laplacian(faces_np, V)
    edge_idx_np = build_flatten_indices(faces_np)
    E = edge_idx_np.shape[1]

    Vp = _round_up(V, _LANE)
    Ep = _round_up(E, _LANE)

    # ---- init-time constants (built once on the host, padded & lane-dense) --
    abs_t = np.abs(template_np)
    base3_np = np.zeros((3, Vp), np.float32)
    base3_np[:, :V] = np.log(abs_t / (1.0 - abs_t)).T
    sign3_np = np.zeros((3, Vp), np.float32)
    sign3_np[:, :V] = np.sign(template_np).T
    lt_pad_np = np.zeros((Vp, Vp), np.float32)
    lt_pad_np[:V, :V] = lap_np.T
    g_np = np.zeros((Vp, 4 * Ep), np.float32)      # one-hot gather matrices
    for k in range(4):
        g_np[edge_idx_np[k], k * Ep + np.arange(E)] = 1.0
    mask_np = np.zeros((1, Ep), np.float32)
    mask_np[0, :E] = 1.0

    num_batch, num_views = 2, 2
    key = jax.random.PRNGKey(0)
    k1, k2, k3 = jax.random.split(key, 3)
    displace = 0.1 * jax.random.normal(k1, (num_batch, V, 3), jnp.float32)
    center = 0.1 * jax.random.normal(k2, (num_batch, 1, 3), jnp.float32)
    texture = jax.random.uniform(k3, (num_batch, V, 3), jnp.float32)

    faces = jnp.asarray(faces_np)

    outs = mesh_model_forward(
        displace, center, texture, faces,
        jnp.asarray(base3_np), jnp.asarray(sign3_np), jnp.asarray(lt_pad_np),
        jnp.asarray(g_np), jnp.asarray(mask_np), num_views=num_views)
    outs = jax.block_until_ready(outs)
    mesh_v, mesh_f, mesh_t, lap_loss, flat_loss = outs

    ref_v, ref_lap, ref_flat = reference_forward(
        jnp.asarray(template_np), jnp.asarray(lap_np),
        jnp.asarray(edge_idx_np), displace, center, num_views)

    assert mesh_v.shape == (num_views * num_batch, V, 3), mesh_v.shape
    assert mesh_f.shape == (num_views * num_batch, F, 3), mesh_f.shape
    assert mesh_t.shape == (num_views * num_batch, V, 3), mesh_t.shape
    assert jnp.allclose(mesh_v, ref_v, atol=1e-4, rtol=1e-4), "vertex mismatch"
    assert jnp.allclose(lap_loss, ref_lap, atol=1e-3, rtol=1e-3), "laplacian mismatch"
    assert jnp.allclose(flat_loss, ref_flat, atol=1e-3, rtol=1e-3), "flatten mismatch"

    print("KERNEL_OK")
</pallas_src>

<mosaic_0001>
module attributes {stable_mosaic.version = 11 : i64} {
  func.func @mesh_fused_kernel(%arg0: i32, %arg1: memref<3x128xf32, #tpu.memory_space<vmem>>, %arg2: memref<3x128xf32, #tpu.memory_space<vmem>>, %arg3: memref<3x8x128xf32, #tpu.memory_space<vmem>>, %arg4: memref<3x8x1xf32, #tpu.memory_space<vmem>>, %arg5: memref<128x128xf32, #tpu.memory_space<vmem>>, %arg6: memref<128x512xf32, #tpu.memory_space<vmem>>, %arg7: memref<1x128xf32, #tpu.memory_space<vmem>>, %arg8: memref<3x8x128xf32, #tpu.memory_space<vmem>>, %arg9: memref<8x1xf32, #tpu.memory_space<vmem>>, %arg10: memref<8x1xf32, #tpu.memory_space<vmem>>) attributes {dimension_semantics = [#tpu.dimension_semantics<parallel>], iteration_bounds = array<i64: 1>, scalar_prefetch = 0 : i64, scratch_operands = 0 : i64, tpu.core_type = #tpu.core_type<tc>, window_params = [{pipeline_mode = #tpu.pipeline_mode<synchronous>, transform_indices = @transform_0, window_bounds = array<i64: 3, 128>}, {pipeline_mode = #tpu.pipeline_mode<synchronous>, transform_indices = @transform_1, window_bounds = array<i64: 3, 128>}, {transform_indices = @transform_2, window_bounds = array<i64: 3, 8, 128>}, {transform_indices = @transform_3, window_bounds = array<i64: 3, 8, 1>}, {pipeline_mode = #tpu.pipeline_mode<synchronous>, transform_indices = @transform_4, window_bounds = array<i64: 128, 128>}, {pipeline_mode = #tpu.pipeline_mode<synchronous>, transform_indices = @transform_5, window_bounds = array<i64: 128, 512>}, {pipeline_mode = #tpu.pipeline_mode<synchronous>, transform_indices = @transform_6, window_bounds = array<i64: 1, 128>}, {transform_indices = @transform_7, window_bounds = array<i64: 3, 8, 128>}, {transform_indices = @transform_8, window_bounds = array<i64: 8, 1>}, {transform_indices = @transform_9, window_bounds = array<i64: 8, 1>}]} {
    %c0 = arith.constant 0 : index
    %c0_0 = arith.constant 0 : index
    %0 = vector.load %arg1[%c0, %c0_0] : memref<3x128xf32, #tpu.memory_space<vmem>>, vector<3x128xf32>
    %1 = vector.shape_cast %0 : vector<3x128xf32> to vector<3x1x128xf32>
    %c0_1 = arith.constant 0 : index
    %c0_2 = arith.constant 0 : index
    %2 = vector.load %arg2[%c0_1, %c0_2] : memref<3x128xf32, #tpu.memory_space<vmem>>, vector<3x128xf32>
    %3 = vector.shape_cast %2 : vector<3x128xf32> to vector<3x1x128xf32>
    %c0_3 = arith.constant 0 : index
    %c0_4 = arith.constant 0 : index
    %c0_5 = arith.constant 0 : index
    %4 = vector.load %arg4[%c0_3, %c0_4, %c0_5] : memref<3x8x1xf32, #tpu.memory_space<vmem>>, vector<3x8x1xf32>
    %5 = math.tanh %4 : vector<3x8x1xf32>
    %c0_6 = arith.constant 0 : index
    %c0_7 = arith.constant 0 : index
    %c0_8 = arith.constant 0 : index
    %6 = vector.load %arg3[%c0_6, %c0_7, %c0_8] : memref<3x8x128xf32, #tpu.memory_space<vmem>>, vector<3x8x128xf32>
    %7 = vector.broadcast %1 : vector<3x1x128xf32> to vector<3x8x128xf32>
    %8 = arith.addf %7, %6 : vector<3x8x128xf32>
    %cst = arith.constant 5.000000e-01 : f32
    %9 = vector.broadcast %cst : f32 to vector<3x8x128xf32>
    %10 = arith.mulf %9, %8 : vector<3x8x128xf32>
    %11 = math.tanh %10 : vector<3x8x128xf32>
    %cst_9 = arith.constant 1.000000e+00 : f32
    %12 = vector.broadcast %cst_9 : f32 to vector<3x8x128xf32>
    %13 = arith.addf %11, %12 : vector<3x8x128xf32>
    %cst_10 = arith.constant 5.000000e-01 : f32
    %14 = vector.broadcast %cst_10 : f32 to vector<3x8x128xf32>
    %15 = arith.mulf %14, %13 : vector<3x8x128xf32>
    %16 = vector.broadcast %3 : vector<3x1x128xf32> to vector<3x8x128xf32>
    %17 = arith.mulf %15, %16 : vector<3x8x128xf32>
    %cst_11 = arith.constant 0.000000e+00 : f32
    %18 = vector.broadcast %cst_11 : f32 to vector<3x8x128xf32>
    %19 = arith.maximumf %17, %18 : vector<3x8x128xf32>
    %cst_12 = arith.constant 1.000000e+00 : f32
    %20 = vector.broadcast %cst_12 : f32 to vector<3x8x1xf32>
    %21 = arith.subf %20, %5 : vector<3x8x1xf32>
    %22 = vector.broadcast %21 : vector<3x8x1xf32> to vector<3x8x128xf32>
    %23 = arith.mulf %19, %22 : vector<3x8x128xf32>
    %cst_13 = arith.constant 0.000000e+00 : f32
    %24 = vector.broadcast %cst_13 : f32 to vector<3x8x128xf32>
    %25 = arith.subf %24, %17 : vector<3x8x128xf32>
    %cst_14 = arith.constant 0.000000e+00 : f32
    %26 = vector.broadcast %cst_14 : f32 to vector<3x8x128xf32>
    %27 = arith.maximumf %25, %26 : vector<3x8x128xf32>
    %cst_15 = arith.constant 1.000000e+00 : f32
    %28 = vector.broadcast %cst_15 : f32 to vector<3x8x1xf32>
    %29 = arith.addf %5, %28 : vector<3x8x1xf32>
    %30 = vector.broadcast %29 : vector<3x8x1xf32> to vector<3x8x128xf32>
    %31 = arith.mulf %27, %30 : vector<3x8x128xf32>
    %32 = arith.subf %23, %31 : vector<3x8x128xf32>
    %33 = vector.broadcast %5 : vector<3x8x1xf32> to vector<3x8x128xf32>
    %34 = arith.addf %32, %33 : vector<3x8x128xf32>
    %c0_16 = arith.constant 0 : index
    %c0_17 = arith.constant 0 : index
    %c0_18 = arith.constant 0 : index
    %35 = vector.load %arg8[%c0_16, %c0_17, %c0_18] : memref<3x8x128xf32, #tpu.memory_space<vmem>>, vector<3x8x128xf32>
    tpu.vector_store %arg8[%c0_16, %c0_17, %c0_18], %34 {strides = array<i32>} : memref<3x8x128xf32, #tpu.memory_space<vmem>>, vector<3x8x128xf32>,
    %36 = vector.shape_cast %34 : vector<3x8x128xf32> to vector<24x128xf32>
    %c0_19 = arith.constant 0 : index
    %c0_20 = arith.constant 0 : index
    %37 = vector.load %arg5[%c0_19, %c0_20] : memref<128x128xf32, #tpu.memory_space<vmem>>, vector<128x128xf32>
    %cst_21 = arith.constant dense<0.000000e+00> : vector<24x128xf32>
    %38 = tpu.matmul %36, %37, %cst_21 {dimension_numbers = #tpu.dot_dimension_numbers<[1], [0], [0], [1], [0, 0, 1, 1], [], []>} : vector<24x128xf32>, vector<128x128xf32>, vector<24x128xf32> -> vector<24x128xf32>
    %39 = arith.mulf %38, %38 : vector<24x128xf32>
    %cst_22 = arith.constant dense<0.000000e+00> : vector<24xf32>
    %40 = vector.multi_reduction <add>, %39, %cst_22 [1] : vector<24x128xf32> to vector<24xf32>
    %41 = vector.shape_cast %40 : vector<24xf32> to vector<24x1xf32>
    %42 = vector.extract_strided_slice %41 {offsets = [0, 0], sizes = [8, 1], strides = [1, 1]} : vector<24x1xf32> to vector<8x1xf32>
    %43 = vector.extract_strided_slice %41 {offsets = [8, 0], sizes = [8, 1], strides = [1, 1]} : vector<24x1xf32> to vector<8x1xf32>
    %44 = arith.addf %42, %43 : vector<8x1xf32>
    %45 = vector.extract_strided_slice %41 {offsets = [16, 0], sizes = [8, 1], strides = [1, 1]} : vector<24x1xf32> to vector<8x1xf32>
    %46 = arith.addf %44, %45 : vector<8x1xf32>
    %c0_23 = arith.constant 0 : index
    %c0_24 = arith.constant 0 : index
    %47 = vector.load %arg9[%c0_23, %c0_24] : memref<8x1xf32, #tpu.memory_space<vmem>>, vector<8x1xf32>
    tpu.vector_store %arg9[%c0_23, %c0_24], %46 {strides = array<i32>} : memref<8x1xf32, #tpu.memory_space<vmem>>, vector<8x1xf32>,
    %c0_25 = arith.constant 0 : index
    %c0_26 = arith.constant 0 : index
    %48 = vector.load %arg6[%c0_25, %c0_26] : memref<128x512xf32, #tpu.memory_space<vmem>>, vector<128x512xf32>
    %cst_27 = arith.constant dense<0.000000e+00> : vector<24x512xf32>
    %49 = tpu.matmul %36, %48, %cst_27 {dimension_numbers = #tpu.dot_dimension_numbers<[1], [0], [0], [1], [0, 0, 1, 1], [], []>} : vector<24x128xf32>, vector<128x512xf32>, vector<24x512xf32> -> vector<24x512xf32>
    %50 = vector.shape_cast %49 : vector<24x512xf32> to vector<3x8x512xf32>
    %51 = vector.extract_strided_slice %50 {offsets = [0, 0, 0], sizes = [3, 8, 128], strides = [1, 1, 1]} : vector<3x8x512xf32> to vector<3x8x128xf32>
    %52 = vector.extract_strided_slice %50 {offsets = [0, 0, 128], sizes = [3, 8, 128], strides = [1, 1, 1]} : vector<3x8x512xf32> to vector<3x8x128xf32>
    %53 = vector.extract_strided_slice %50 {offsets = [0, 0, 256], sizes = [3, 8, 128], strides = [1, 1, 1]} : vector<3x8x512xf32> to vector<3x8x128xf32>
    %54 = vector.extract_strided_slice %50 {offsets = [0, 0, 384], sizes = [3, 8, 128], strides = [1, 1, 1]} : vector<3x8x512xf32> to vector<3x8x128xf32>
    %55 = arith.subf %52, %51 : vector<3x8x128xf32>
    %56 = arith.subf %53, %51 : vector<3x8x128xf32>
    %57 = arith.subf %54, %51 : vector<3x8x128xf32>
    %58 = vector.extract_strided_slice %55 {offsets = [0, 0, 0], sizes = [1, 8, 128], strides = [1, 1, 1]} : vector<3x8x128xf32> to vector<1x8x128xf32>
    %59 = vector.shape_cast %58 : vector<1x8x128xf32> to vector<8x128xf32>
    %60 = vector.extract_strided_slice %55 {offsets = [0, 0, 0], sizes = [1, 8, 128], strides = [1, 1, 1]} : vector<3x8x128xf32> to vector<1x8x128xf32>
    %61 = vector.shape_cast %60 : vector<1x8x128xf32> to vector<8x128xf32>
    %62 = arith.mulf %59, %61 : vector<8x128xf32>
    %63 = vector.extract_strided_slice %55 {offsets = [1, 0, 0], sizes = [1, 8, 128], strides = [1, 1, 1]} : vector<3x8x128xf32> to vector<1x8x128xf32>
    %64 = vector.shape_cast %63 : vector<1x8x128xf32> to vector<8x128xf32>
    %65 = vector.extract_strided_slice %55 {offsets = [1, 0, 0], sizes = [1, 8, 128], strides = [1, 1, 1]} : vector<3x8x128xf32> to vector<1x8x128xf32>
    %66 = vector.shape_cast %65 : vector<1x8x128xf32> to vector<8x128xf32>
    %67 = arith.mulf %64, %66 : vector<8x128xf32>
    %68 = arith.addf %62, %67 : vector<8x128xf32>
    %69 = vector.extract_strided_slice %55 {offsets = [2, 0, 0], sizes = [1, 8, 128], strides = [1, 1, 1]} : vector<3x8x128xf32> to vector<1x8x128xf32>
    %70 = vector.shape_cast %69 : vector<1x8x128xf32> to vector<8x128xf32>
    %71 = vector.extract_strided_slice %55 {offsets = [2, 0, 0], sizes = [1, 8, 128], strides = [1, 1, 1]} : vector<3x8x128xf32> to vector<1x8x128xf32>
    %72 = vector.shape_cast %71 : vector<1x8x128xf32> to vector<8x128xf32>
    %73 = arith.mulf %70, %72 : vector<8x128xf32>
    %74 = arith.addf %68, %73 : vector<8x128xf32>
    %cst_28 = arith.constant 9.99999997E-7 : f32
    %75 = vector.broadcast %cst_28 : f32 to vector<8x128xf32>
    %76 = arith.addf %74, %75 : vector<8x128xf32>
    %77 = math.sqrt %76 : vector<8x128xf32>
    %78 = vector.extract_strided_slice %56 {offsets = [0, 0, 0], sizes = [1, 8, 128], strides = [1, 1, 1]} : vector<3x8x128xf32> to vector<1x8x128xf32>
    %79 = vector.shape_cast %78 : vector<1x8x128xf32> to vector<8x128xf32>
    %80 = vector.extract_strided_slice %56 {offsets = [0, 0, 0], sizes = [1, 8, 128], strides = [1, 1, 1]} : vector<3x8x128xf32> to vector<1x8x128xf32>
    %81 = vector.shape_cast %80 : vector<1x8x128xf32> to vector<8x128xf32>
    %82 = arith.mulf %79, %81 : vector<8x128xf32>
    %83 = vector.extract_strided_slice %56 {offsets = [1, 0, 0], sizes = [1, 8, 128], strides = [1, 1, 1]} : vector<3x8x128xf32> to vector<1x8x128xf32>
    %84 = vector.shape_cast %83 : vector<1x8x128xf32> to vector<8x128xf32>
    %85 = vector.extract_strided_slice %56 {offsets = [1, 0, 0], sizes = [1, 8, 128], strides = [1, 1, 1]} : vector<3x8x128xf32> to vector<1x8x128xf32>
    %86 = vector.shape_cast %85 : vector<1x8x128xf32> to vector<8x128xf32>
    %87 = arith.mulf %84, %86 : vector<8x128xf32>
    %88 = arith.addf %82, %87 : vector<8x128xf32>
    %89 = vector.extract_strided_slice %56 {offsets = [2, 0, 0], sizes = [1, 8, 128], strides = [1, 1, 1]} : vector<3x8x128xf32> to vector<1x8x128xf32>
    %90 = vector.shape_cast %89 : vector<1x8x128xf32> to vector<8x128xf32>
    %91 = vector.extract_strided_slice %56 {offsets = [2, 0, 0], sizes = [1, 8, 128], strides = [1, 1, 1]} : vector<3x8x128xf32> to vector<1x8x128xf32>
    %92 = vector.shape_cast %91 : vector<1x8x128xf32> to vector<8x128xf32>
    %93 = arith.mulf %90, %92 : vector<8x128xf32>
    %94 = arith.addf %88, %93 : vector<8x128xf32>
    %cst_29 = arith.constant 9.99999997E-7 : f32
    %95 = vector.broadcast %cst_29 : f32 to vector<8x128xf32>
    %96 = arith.addf %94, %95 : vector<8x128xf32>
    %97 = math.sqrt %96 : vector<8x128xf32>
    %98 = vector.extract_strided_slice %57 {offsets = [0, 0, 0], sizes = [1, 8, 128], strides = [1, 1, 1]} : vector<3x8x128xf32> to vector<1x8x128xf32>
    %99 = vector.shape_cast %98 : vector<1x8x128xf32> to vector<8x128xf32>
    %100 = vector.extract_strided_slice %57 {offsets = [0, 0, 0], sizes = [1, 8, 128], strides = [1, 1, 1]} : vector<3x8x128xf32> to vector<1x8x128xf32>
    %101 = vector.shape_cast %100 : vector<1x8x128xf32> to vector<8x128xf32>
    %102 = arith.mulf %99, %101 : vector<8x128xf32>
    %103 = vector.extract_strided_slice %57 {offsets = [1, 0, 0], sizes = [1, 8, 128], strides = [1, 1, 1]} : vector<3x8x128xf32> to vector<1x8x128xf32>
    %104 = vector.shape_cast %103 : vector<1x8x128xf32> to vector<8x128xf32>
    %105 = vector.extract_strided_slice %57 {offsets = [1, 0, 0], sizes = [1, 8, 128], strides = [1, 1, 1]} : vector<3x8x128xf32> to vector<1x8x128xf32>
    %106 = vector.shape_cast %105 : vector<1x8x128xf32> to vector<8x128xf32>
    %107 = arith.mulf %104, %106 : vector<8x128xf32>
    %108 = arith.addf %102, %107 : vector<8x128xf32>
    %109 = vector.extract_strided_slice %57 {offsets = [2, 0, 0], sizes = [1, 8, 128], strides = [1, 1, 1]} : vector<3x8x128xf32> to vector<1x8x128xf32>
    %110 = vector.shape_cast %109 : vector<1x8x128xf32> to vector<8x128xf32>
    %111 = vector.extract_strided_slice %57 {offsets = [2, 0, 0], sizes = [1, 8, 128], strides = [1, 1, 1]} : vector<3x8x128xf32> to vector<1x8x128xf32>
    %112 = vector.shape_cast %111 : vector<1x8x128xf32> to vector<8x128xf32>
    %113 = arith.mulf %110, %112 : vector<8x128xf32>
    %114 = arith.addf %108, %113 : vector<8x128xf32>
    %cst_30 = arith.constant 9.99999997E-7 : f32
    %115 = vector.broadcast %cst_30 : f32 to vector<8x128xf32>
    %116 = arith.addf %114, %115 : vector<8x128xf32>
    %117 = math.sqrt %116 : vector<8x128xf32>
    %118 = vector.extract_strided_slice %55 {offsets = [0, 0, 0], sizes = [1, 8, 128], strides = [1, 1, 1]} : vector<3x8x128xf32> to vector<1x8x128xf32>
    %119 = vector.shape_cast %118 : vector<1x8x128xf32> to vector<8x128xf32>
    %120 = vector.extract_strided_slice %56 {offsets = [0, 0, 0], sizes = [1, 8, 128], strides = [1, 1, 1]} : vector<3x8x128xf32> to vector<1x8x128xf32>
    %121 = vector.shape_cast %120 : vector<1x8x128xf32> to vector<8x128xf32>
    %122 = arith.mulf %119, %121 : vector<8x128xf32>
    %123 = vector.extract_strided_slice %55 {offsets = [1, 0, 0], sizes = [1, 8, 128], strides = [1, 1, 1]} : vector<3x8x128xf32> to vector<1x8x128xf32>
    %124 = vector.shape_cast %123 : vector<1x8x128xf32> to vector<8x128xf32>
    %125 = vector.extract_strided_slice %56 {offsets = [1, 0, 0], sizes = [1, 8, 128], strides = [1, 1, 1]} : vector<3x8x128xf32> to vector<1x8x128xf32>
    %126 = vector.shape_cast %125 : vector<1x8x128xf32> to vector<8x128xf32>
    %127 = arith.mulf %124, %126 : vector<8x128xf32>
    %128 = arith.addf %122, %127 : vector<8x128xf32>
    %129 = vector.extract_strided_slice %55 {offsets = [2, 0, 0], sizes = [1, 8, 128], strides = [1, 1, 1]} : vector<3x8x128xf32> to vector<1x8x128xf32>
    %130 = vector.shape_cast %129 : vector<1x8x128xf32> to vector<8x128xf32>
    %131 = vector.extract_strided_slice %56 {offsets = [2, 0, 0], sizes = [1, 8, 128], strides = [1, 1, 1]} : vector<3x8x128xf32> to vector<1x8x128xf32>
    %132 = vector.shape_cast %131 : vector<1x8x128xf32> to vector<8x128xf32>
    %133 = arith.mulf %130, %132 : vector<8x128xf32>
    %134 = arith.addf %128, %133 : vector<8x128xf32>
    %135 = vector.extract_strided_slice %55 {offsets = [0, 0, 0], sizes = [1, 8, 128], strides = [1, 1, 1]} : vector<3x8x128xf32> to vector<1x8x128xf32>
    %136 = vector.shape_cast %135 : vector<1x8x128xf32> to vector<8x128xf32>
    %137 = vector.extract_strided_slice %57 {offsets = [0, 0, 0], sizes = [1, 8, 128], strides = [1, 1, 1]} : vector<3x8x128xf32> to vector<1x8x128xf32>
    %138 = vector.shape_cast %137 : vector<1x8x128xf32> to vector<8x128xf32>
    %139 = arith.mulf %136, %138 : vector<8x128xf32>
    %140 = vector.extract_strided_slice %55 {offsets = [1, 0, 0], sizes = [1, 8, 128], strides = [1, 1, 1]} : vector<3x8x128xf32> to vector<1x8x128xf32>
    %141 = vector.shape_cast %140 : vector<1x8x128xf32> to vector<8x128xf32>
    %142 = vector.extract_strided_slice %57 {offsets = [1, 0, 0], sizes = [1, 8, 128], strides = [1, 1, 1]} : vector<3x8x128xf32> to vector<1x8x128xf32>
    %143 = vector.shape_cast %142 : vector<1x8x128xf32> to vector<8x128xf32>
    %144 = arith.mulf %141, %143 : vector<8x128xf32>
    %145 = arith.addf %139, %144 : vector<8x128xf32>
    %146 = vector.extract_strided_slice %55 {offsets = [2, 0, 0], sizes = [1, 8, 128], strides = [1, 1, 1]} : vector<3x8x128xf32> to vector<1x8x128xf32>
    %147 = vector.shape_cast %146 : vector<1x8x128xf32> to vector<8x128xf32>
    %148 = vector.extract_strided_slice %57 {offsets = [2, 0, 0], sizes = [1, 8, 128], strides = [1, 1, 1]} : vector<3x8x128xf32> to vector<1x8x128xf32>
    %149 = vector.shape_cast %148 : vector<1x8x128xf32> to vector<8x128xf32>
    %150 = arith.mulf %147, %149 : vector<8x128xf32>
    %151 = arith.addf %145, %150 : vector<8x128xf32>
    %152 = arith.mulf %77, %97 : vector<8x128xf32>
    %cst_31 = arith.constant 9.99999997E-7 : f32
    %153 = vector.broadcast %cst_31 : f32 to vector<8x128xf32>
    %154 = arith.addf %152, %153 : vector<8x128xf32>
    %155 = arith.divf %134, %154 : vector<8x128xf32>
    %156 = arith.mulf %77, %117 : vector<8x128xf32>
    %cst_32 = arith.constant 9.99999997E-7 : f32
    %157 = vector.broadcast %cst_32 : f32 to vector<8x128xf32>
    %158 = arith.addf %156, %157 : vector<8x128xf32>
    %159 = arith.divf %151, %158 : vector<8x128xf32>
    %160 = arith.mulf %155, %155 : vector<8x128xf32>
    %cst_33 = arith.constant 1.000000e+00 : f32
    %161 = vector.broadcast %cst_33 : f32 to vector<8x128xf32>
    %162 = arith.subf %161, %160 : vector<8x128xf32>
    %cst_34 = arith.constant 0.000000e+00 : f32
    %163 = vector.broadcast %cst_34 : f32 to vector<8x128xf32>
    %164 = arith.maximumf %162, %163 : vector<8x128xf32>
    %165 = math.sqrt %164 : vector<8x128xf32>
    %166 = arith.mulf %159, %159 : vector<8x128xf32>
    %cst_35 = arith.constant 1.000000e+00 : f32
    %167 = vector.broadcast %cst_35 : f32 to vector<8x128xf32>
    %168 = arith.subf %167, %166 : vector<8x128xf32>
    %cst_36 = arith.constant 0.000000e+00 : f32
    %169 = vector.broadcast %cst_36 : f32 to vector<8x128xf32>
    %170 = arith.maximumf %168, %169 : vector<8x128xf32>
    %171 = math.sqrt %170 : vector<8x128xf32>
    %cst_37 = arith.constant 9.99999997E-7 : f32
    %172 = vector.broadcast %cst_37 : f32 to vector<8x128xf32>
    %173 = arith.addf %74, %172 : vector<8x128xf32>
    %174 = arith.divf %134, %173 : vector<8x128xf32>
    %175 = vector.shape_cast %174 : vector<8x128xf32> to vector<1x8x128xf32>
    %176 = vector.broadcast %175 : vector<1x8x128xf32> to vector<3x8x128xf32>
    %177 = arith.mulf %55, %176 : vector<3x8x128xf32>
    %178 = arith.subf %56, %177 : vector<3x8x128xf32>
    %cst_38 = arith.constant 9.99999997E-7 : f32
    %179 = vector.broadcast %cst_38 : f32 to vector<8x128xf32>
    %180 = arith.addf %74, %179 : vector<8x128xf32>
    %181 = arith.divf %151, %180 : vector<8x128xf32>
    %182 = vector.shape_cast %181 : vector<8x128xf32> to vector<1x8x128xf32>
    %183 = vector.broadcast %182 : vector<1x8x128xf32> to vector<3x8x128xf32>
    %184 = arith.mulf %55, %183 : vector<3x8x128xf32>
    %185 = arith.subf %57, %184 : vector<3x8x128xf32>
    %186 = vector.extract_strided_slice %178 {offsets = [0, 0, 0], sizes = [1, 8, 128], strides = [1, 1, 1]} : vector<3x8x128xf32> to vector<1x8x128xf32>
    %187 = vector.shape_cast %186 : vector<1x8x128xf32> to vector<8x128xf32>
    %188 = vector.extract_strided_slice %185 {offsets = [0, 0, 0], sizes = [1, 8, 128], strides = [1, 1, 1]} : vector<3x8x128xf32> to vector<1x8x128xf32>
    %189 = vector.shape_cast %188 : vector<1x8x128xf32> to vector<8x128xf32>
    %190 = arith.mulf %187, %189 : vector<8x128xf32>
    %191 = vector.extract_strided_slice %178 {offsets = [1, 0, 0], sizes = [1, 8, 128], strides = [1, 1, 1]} : vector<3x8x128xf32> to vector<1x8x128xf32>
    %192 = vector.shape_cast %191 : vector<1x8x128xf32> to vector<8x128xf32>
    %193 = vector.extract_strided_slice %185 {offsets = [1, 0, 0], sizes = [1, 8, 128], strides = [1, 1, 1]} : vector<3x8x128xf32> to vector<1x8x128xf32>
    %194 = vector.shape_cast %193 : vector<1x8x128xf32> to vector<8x128xf32>
    %195 = arith.mulf %192, %194 : vector<8x128xf32>
    %196 = arith.addf %190, %195 : vector<8x128xf32>
    %197 = vector.extract_strided_slice %178 {offsets = [2, 0, 0], sizes = [1, 8, 128], strides = [1, 1, 1]} : vector<3x8x128xf32> to vector<1x8x128xf32>
    %198 = vector.shape_cast %197 : vector<1x8x128xf32> to vector<8x128xf32>
    %199 = vector.extract_strided_slice %185 {offsets = [2, 0, 0], sizes = [1, 8, 128], strides = [1, 1, 1]} : vector<3x8x128xf32> to vector<1x8x128xf32>
    %200 = vector.shape_cast %199 : vector<1x8x128xf32> to vector<8x128xf32>
    %201 = arith.mulf %198, %200 : vector<8x128xf32>
    %202 = arith.addf %196, %201 : vector<8x128xf32>
    %203 = arith.mulf %97, %165 : vector<8x128xf32>
    %204 = arith.mulf %203, %117 : vector<8x128xf32>
    %205 = arith.mulf %204, %171 : vector<8x128xf32>
    %cst_39 = arith.constant 9.99999997E-7 : f32
    %206 = vector.broadcast %cst_39 : f32 to vector<8x128xf32>
    %207 = arith.addf %205, %206 : vector<8x128xf32>
    %208 = arith.divf %202, %207 : vector<8x128xf32>
    %cst_40 = arith.constant 1.000000e+00 : f32
    %209 = vector.broadcast %cst_40 : f32 to vector<8x128xf32>
    %210 = arith.addf %208, %209 : vector<8x128xf32>
    %cst_41 = arith.constant 1.000000e+00 : f32
    %211 = vector.broadcast %cst_41 : f32 to vector<8x128xf32>
    %212 = arith.addf %208, %211 : vector<8x128xf32>
    %213 = arith.mulf %210, %212 : vector<8x128xf32>
    %c0_42 = arith.constant 0 : index
    %c0_43 = arith.constant 0 : index
    %214 = vector.load %arg7[%c0_42, %c0_43] : memref<1x128xf32, #tpu.memory_space<vmem>>, vector<1x128xf32>
    %215 = vector.broadcast %214 : vector<1x128xf32> to vector<8x128xf32>
    %216 = arith.mulf %213, %215 : vector<8x128xf32>
    %cst_44 = arith.constant dense<0.000000e+00> : vector<8xf32>
    %217 = vector.multi_reduction <add>, %216, %cst_44 [1] : vector<8x128xf32> to vector<8xf32>
    %218 = vector.shape_cast %217 : vector<8xf32> to vector<8x1xf32>
    %c0_45 = arith.constant 0 : index
    %c0_46 = arith.constant 0 : index
    %219 = vector.load %arg10[%c0_45, %c0_46] : memref<8x1xf32, #tpu.memory_space<vmem>>, vector<8x1xf32>
    tpu.vector_store %arg10[%c0_45, %c0_46], %218 {strides = array<i32>} : memref<8x1xf32, #tpu.memory_space<vmem>>, vector<8x1xf32>,
    return
  }
  func.func @transform_0(%arg0: i32) -> (i32, i32) {
    %c0_i32 = arith.constant 0 : i32
    %c0_i32_0 = arith.constant 0 : i32
    %c0_i32_1 = arith.constant 0 : i32
    return %c0_i32, %c0_i32_0 : i32, i32
  }
  func.func @transform_1(%arg0: i32) -> (i32, i32) {
    %c0_i32 = arith.constant 0 : i32
    %c0_i32_0 = arith.constant 0 : i32
    %c0_i32_1 = arith.constant 0 : i32
    return %c0_i32, %c0_i32_0 : i32, i32
  }
  func.func @transform_2(%arg0: i32) -> (i32, i32, i32) {
    %c0_i32 = arith.constant 0 : i32
    %c0_i32_0 = arith.constant 0 : i32
    %c0_i32_1 = arith.constant 0 : i32
    return %c0_i32, %arg0, %c0_i32_0 : i32, i32, i32
  }
  func.func @transform_3(%arg0: i32) -> (i32, i32, i32) {
    %c0_i32 = arith.constant 0 : i32
    %c0_i32_0 = arith.constant 0 : i32
    %c0_i32_1 = arith.constant 0 : i32
    return %c0_i32, %arg0, %c0_i32_0 : i32, i32, i32
  }
  func.func @transform_4(%arg0: i32) -> (i32, i32) {
    %c0_i32 = arith.constant 0 : i32
    %c0_i32_0 = arith.constant 0 : i32
    %c0_i32_1 = arith.constant 0 : i32
    return %c0_i32, %c0_i32_0 : i32, i32
  }
  func.func @transform_5(%arg0: i32) -> (i32, i32) {
    %c0_i32 = arith.constant 0 : i32
    %c0_i32_0 = arith.constant 0 : i32
    %c0_i32_1 = arith.constant 0 : i32
    return %c0_i32, %c0_i32_0 : i32, i32
  }
  func.func @transform_6(%arg0: i32) -> (i32, i32) {
    %c0_i32 = arith.constant 0 : i32
    %c0_i32_0 = arith.constant 0 : i32
    %c0_i32_1 = arith.constant 0 : i32
    return %c0_i32, %c0_i32_0 : i32, i32
  }
  func.func @transform_7(%arg0: i32) -> (i32, i32, i32) {
    %c0_i32 = arith.constant 0 : i32
    %c0_i32_0 = arith.constant 0 : i32
    %c0_i32_1 = arith.constant 0 : i32
    return %c0_i32, %arg0, %c0_i32_0 : i32, i32, i32
  }
  func.func @transform_8(%arg0: i32) -> (i32, i32) {
    %c0_i32 = arith.constant 0 : i32
    %c0_i32_0 = arith.constant 0 : i32
    return %arg0, %c0_i32 : i32, i32
  }
  func.func @transform_9(%arg0: i32) -> (i32, i32) {
    %c0_i32 = arith.constant 0 : i32
    %c0_i32_0 = arith.constant 0 : i32
    return %arg0, %c0_i32 : i32, i32
  }
}

</mosaic_0001>

<bundles_post_ra>
// kernel: mesh_model_forward.1
= control target key start
LH: loop header
LB: loop body
LE: loop exit
PB: predicated region body
PF: predicated region fallthrough
CT: control target
= control target key end

     0   :  { %15 = vsyncpa [#allocation3], 0  ;;  %s961_s0 = inlined_call_operand.vmem [shape: f32[3,128], index: 0, kind: input, shape index: {}]   ;;  %s962_s1 = inlined_call_operand.vmem [shape: f32[3,128], index: 1, kind: input, shape index: {}]   ;;  %s963_s2 = inlined_call_operand.vmem [shape: f32[3,8,128], index: 2, kind: input, shape index: {}]   ;;  %s964_s3 = inlined_call_operand.vmem [shape: f32[3,8,1], index: 3, kind: input, shape index: {}]   ;;  %s965_s4 = inlined_call_operand.hbm [shape: f32[128,128], index: 4, kind: input, shape index: {}]   ;;  %s966_s5 = inlined_call_operand.hbm [shape: f32[128,512], index: 5, kind: input, shape index: {}]   ;;  %s967_s6 = inlined_call_operand.vmem [shape: f32[1,128], index: 6, kind: input, shape index: {}]   ;;  %s968_s7 = inlined_call_operand.vmem [shape: f32[3,8,128], index: 7, kind: output, shape index: {0}]   ;;  %s969_s8 = inlined_call_operand.vmem [shape: f32[8,1], index: 8, kind: output, shape index: {1}]   ;;  %s970_s9 = inlined_call_operand.vmem [shape: f32[8,1], index: 9, kind: output, shape index: {2}]  }
   0x1   :  { %s29_s11 = sshll.u32 %s965_s4, 4  ;;  %s30_s11 = int_to_ptr.hbm [resolvable:$true] %s29_s11 }
   0x2   :  { %16 = vsyncpa [#allocation5], 0  ;;  %s744_s12 = smov [#allocation2]   ;;  %s42_s16 = sshll.u32 %s966_s5, 4  ;;  %s43_s16 = int_to_ptr.hbm [resolvable:$true] %s42_s16 }
   0x3   :  { %s31_s13 = sshll.u32 %s744_s12, 4  ;;  %s745_s17 = smov 128   ;;  %s32_s13 = int_to_ptr.vmem [resolvable:$true] %s31_s13 }
   0x4   :  { %s746_s18 = smov 8   ;;  %s747_s19 = smov [#allocation4]  }
   0x5   :  { %37 = dma.hbm_to_vmem [thread:$0]  %s30_s11, 2048, %s32_s13, [#allocation3], %s745_s17, %s745_s17, %s746_s18  }
   0x6   :  { %s44_s20 = sshll.u32 %s747_s19, 4  ;;  %s748_s21 = smov 512   ;;  %s45_s20 = int_to_ptr.vmem [resolvable:$true] %s44_s20 }
   0x7   :  { %s749_s22 = smov 32  }
   0x8   :  { %50 = dma.hbm_to_vmem [thread:$0]  %s43_s16, 8192, %s45_s20, [#allocation5], %s748_s21, %s748_s21, %s749_s22  }
   0x9   :  { %740 = dma.done.wait [#allocation3], 2048  }
   0xa   :  { %741 = vsyncadd [#allocation3], 4294965248 }
   0xb   :  { %742 = dma.done.wait [#allocation5], 8192  }
   0xc   :  { %743 = vsyncadd [#allocation5], 4294959104  ;;  %v750_v0 = vmov 0   ;;  %v69_v1 = vld [vmem:[%s964_s3] sm:$0xff]  ;;  %v70_v2 = vld [vmem:[%s964_s3 + $0x8] sm:$0xff] }
   0xd   :  { %659 = vset.pattern.permute.xlu1 %v750_v0  ;;  %658 = vset.pattern.permute.xlu0 %v750_v0  ;;  %662 = vtanh.f32 %v69_v1  ;;  %v198_v3 = vld [vmem:[#allocation2 + $0x78] sm:$0xff]  ;;  %v298_v4 = vld [vmem:[#allocation4 + $0x1e0] sm:$0xff]  ;;  %v299_v5 = vld [vmem:[#allocation4 + $0x1e8] sm:$0xff] }
   0xe   :  { %660 = vset.pattern.permute.xlu2 %v750_v0  ;;  %664 = vtanh.f32 %v70_v2  ;;  %199 = vmatpush.msra.mxu0 %v198_v3  ;;  %v197_v6 = vld [vmem:[#allocation2 + $0x70] sm:$0xff]  ;;  %v294_v7 = vld [vmem:[#allocation4 + $0x1c0] sm:$0xff]  ;;  %v295_v8 = vld [vmem:[#allocation4 + $0x1c8] sm:$0xff] }
   0xf   :  { %302 = vmatpush.msra.mxu1 %v298_v4  ;;  %328 = vmatpush.msra.mxu2 %v299_v5  ;;  %v196_v9 = vld [vmem:[#allocation2 + $0x68] sm:$0xff]  ;;  %v290_v10 = vld [vmem:[#allocation4 + $0x1a0] sm:$0xff]  ;;  %v300_v13 = vld [vmem:[#allocation4 + $0x1f0] sm:$0xff] }
  0x10   :  { %200 = vmatpush.msra.mxu0 %v197_v6  ;;  %v291_v11 = vld [vmem:[#allocation4 + $0x1a8] sm:$0xff]  ;;  %v195_v12 = vld [vmem:[#allocation2 + $0x60] sm:$0xff]  ;;  %354 = vmatpush.msra.mxu3 %v300_v13  ;;  %v194_v17 = vld [vmem:[#allocation2 + $0x58] sm:$0xff] }
  0x11   :  { %303 = vmatpush.msra.mxu1 %v294_v7  ;;  %329 = vmatpush.msra.mxu2 %v295_v8  ;;  %v286_v14 = vld [vmem:[#allocation4 + $0x180] sm:$0xff]  ;;  %v287_v15 = vld [vmem:[#allocation4 + $0x188] sm:$0xff]  ;;  %v71_v20 = vld [vmem:[%s964_s3 + $0x10] sm:$0xff] }
  0x12   :  { %201 = vmatpush.msra.mxu0 %v196_v9  ;;  %v282_v21 = vld [vmem:[#allocation4 + $0x160] sm:$0xff]  ;;  %v283_v23 = vld [vmem:[#allocation4 + $0x168] sm:$0xff]  ;;  %v296_v24 = vld [vmem:[#allocation4 + $0x1d0] sm:$0xff]  ;;  %666 = vtanh.f32 %v71_v20 }
  0x13   :  { %304 = vmatpush.msra.mxu1 %v290_v10  ;;  %v663_v16 = vpop.eup %662  ;;  %330 = vmatpush.msra.mxu2 %v291_v11  ;;  %v193_v25 = vld [vmem:[#allocation2 + $0x50] sm:$0xff]  ;;  %v278_v26 = vld [vmem:[#allocation4 + $0x140] sm:$0xff]  ;;  %v279_v27 = vld [vmem:[#allocation4 + $0x148] sm:$0xff] }
  0x14   :  { %v665_v18 = vpop.eup %664  ;;  %164 = vperm.xlu1 %659, %v663_v16   ;;  %v111_v19 = vsub.f32 1.0, %v663_v16  ;;  %202 = vmatpush.msra.mxu0 %v195_v12  ;;  %v292_v28 = vld [vmem:[#allocation4 + $0x1b0] sm:$0xff]  ;;  %v192_v30 = vld [vmem:[#allocation2 + $0x48] sm:$0xff]  ;;  %v274_v31 = vld [vmem:[#allocation4 + $0x120] sm:$0xff]  ;;  %v138_v33 = vadd.f32 1.0, %v663_v16 }
  0x15   :  { %v139_v22 = vadd.f32 1.0, %v665_v18  ;;  %305 = vmatpush.msra.mxu1 %v286_v14  ;;  %331 = vmatpush.msra.mxu2 %v287_v15  ;;  %v112_v29 = vsub.f32 1.0, %v665_v18  ;;  %v275_v32 = vld [vmem:[#allocation4 + $0x128] sm:$0xff]  ;;  %v288_v34 = vld [vmem:[#allocation4 + $0x190] sm:$0xff]  ;;  %v191_v35 = vld [vmem:[#allocation2 + $0x40] sm:$0xff] }
  0x16   :  { %116 = vperm.xlu0 %658, %v111_v19   ;;  %203 = vmatpush.msra.mxu0 %v194_v17  ;;  %v270_v36 = vld [vmem:[#allocation4 + $0x100] sm:$0xff]  ;;  %v271_v37 = vld [vmem:[#allocation4 + $0x108] sm:$0xff]  ;;  %v284_v39 = vld [vmem:[#allocation4 + $0x170] sm:$0xff] }
  0x17   :  { %148 = vperm.xlu2 %660, %v139_v22   ;;  %306 = vmatpush.msra.mxu1 %v282_v21  ;;  %v190_v40 = vld [vmem:[#allocation2 + $0x38] sm:$0xff]  ;;  %v266_v41 = vld [vmem:[#allocation4 + $0xe0] sm:$0xff]  ;;  %v267_v42 = vld [vmem:[#allocation4 + $0xe8] sm:$0xff] }
  0x18   :  { %332 = vmatpush.msra.mxu2 %v283_v23  ;;  %355 = vmatpush.msra.mxu3 %v296_v24  ;;  %v667_v38 = vpop.eup %666  ;;  %v280_v43 = vld [vmem:[#allocation4 + $0x150] sm:$0xff]  ;;  %v262_v46 = vld [vmem:[#allocation4 + $0xc0] sm:$0xff]  ;;  %v263_v47 = vld [vmem:[#allocation4 + $0xc8] sm:$0xff] }
  0x19   :  { %204 = vmatpush.msra.mxu0 %v193_v25  ;;  %307 = vmatpush.msra.mxu1 %v278_v26  ;;  %v189_v44 = vld [vmem:[#allocation2 + $0x30] sm:$0xff]  ;;  %v140_v45 = vadd.f32 1.0, %v667_v38  ;;  %v113_v49 = vsub.f32 1.0, %v667_v38  ;;  %v188_v50 = vld [vmem:[#allocation2 + $0x28] sm:$0xff]  ;;  %v258_v51 = vld [vmem:[#allocation4 + $0xa0] sm:$0xff] }
  0x1a   :  { %333 = vmatpush.msra.mxu2 %v279_v27  ;;  %356 = vmatpush.msra.mxu3 %v292_v28  ;;  %v276_v48 = vld [vmem:[#allocation4 + $0x130] sm:$0xff]  ;;  %v259_v52 = vld [vmem:[#allocation4 + $0xa8] sm:$0xff]  ;;  %v61_v54 = vld [vmem:[%s961_s0] sm:$0x7] }
  0x1b   :  { %205 = vmatpush.msra.mxu0 %v192_v30  ;;  %308 = vmatpush.msra.mxu1 %v274_v31  ;;  %v272_v53 = vld [vmem:[#allocation4 + $0x110] sm:$0xff]  ;;  %v63_v55 = vrot.slane %v61_v54, 1  ;;  %v76_v57 = vld [vmem:[%s963_s2 + $0x8] sm:$0xff]  ;;  %v187_v58 = vld [vmem:[#allocation2 + $0x20] sm:$0xff]  ;;  %v78_v6 = vperm.slane %v61_v54, 0  ;;  %v64_v14 = vrot.slane %v61_v54, 2 }
  0x1c   :  { %121 = vperm.xlu1 %659, %v112_v29   ;;  %334 = vmatpush.msra.mxu2 %v275_v32  ;;  %v254_v59 = vld [vmem:[#allocation4 + $0x80] sm:$0xff]  ;;  %v255_v60 = vld [vmem:[#allocation4 + $0x88] sm:$0xff]  ;;  %v268_v61 = vld [vmem:[#allocation4 + $0xf0] sm:$0xff] }
  0x1d   :  { %357 = vmatpush.msra.mxu3 %v288_v34  ;;  %206 = vmatpush.msra.mxu0 %v191_v35  ;;  %v79_v56 = vperm.slane %v63_v55, 0  ;;  %v186_v63 = vld [vmem:[#allocation2 + $0x18] sm:$0xff]  ;;  %v250_v0 = vld [vmem:[#allocation4 + $0x60] sm:$0xff]  ;;  %v251_v1 = vld [vmem:[#allocation4 + $0x68] sm:$0xff]  ;;  %v80_v21 = vperm.slane %v64_v14, 0 }
  0x1e   :  { %143 = vperm.xlu0 %658, %v138_v33   ;;  %309 = vmatpush.msra.mxu1 %v270_v36  ;;  %v75_v2 = vld [vmem:[%s963_s2] sm:$0xff]  ;;  %v264_v3 = vld [vmem:[#allocation4 + $0xd0] sm:$0xff]  ;;  %v247_v7 = vld [vmem:[#allocation4 + $0x48] sm:$0xff] }
  0x1f   :  { %169 = vperm.xlu2 %660, %v665_v18   ;;  %335 = vmatpush.msra.mxu2 %v271_v37  ;;  %v85_v62 = vadd.f32 %v79_v56, %v76_v57  ;;  %v185_v4 = vld [vmem:[#allocation2 + $0x10] sm:$0xff]  ;;  %v246_v5 = vld [vmem:[#allocation4 + $0x40] sm:$0xff]  ;;  %v184_v9 = vld [vmem:[#allocation2 + $0x8] sm:$0xff]  ;;  %v84_v15 = vadd.f32 %v78_v6, %v75_v2 }
  0x20   :  { %358 = vmatpush.msra.mxu3 %v284_v39  ;;  %207 = vmatpush.msra.mxu0 %v190_v40  ;;  %v260_v8 = vld [vmem:[#allocation4 + $0xb0] sm:$0xff]  ;;  %v242_v10 = vld [vmem:[#allocation4 + $0x20] sm:$0xff]  ;;  %v243_v11 = vld [vmem:[#allocation4 + $0x28] sm:$0xff] }
  0x21   :  { %310 = vmatpush.msra.mxu1 %v266_v41  ;;  %336 = vmatpush.msra.mxu2 %v267_v42  ;;  %v256_v12 = vld [vmem:[#allocation4 + $0x90] sm:$0xff]  ;;  %v88_v13 = vmul.f32 0.5, %v85_v62  ;;  %v183_v16 = vld [vmem:[#allocation2] sm:$0xff]  ;;  %v239_v18 = vld [vmem:[#allocation4 + $0x8] sm:$0xff]  ;;  %v87_v25 = vmul.f32 0.5, %v84_v15 }
  0x22   :  { %359 = vmatpush.msra.mxu3 %v280_v43  ;;  %208 = vmatpush.msra.mxu0 %v189_v44  ;;  %v238_v17 = vld [vmem:[#allocation4] sm:$0xff]  ;;  %v252_v19 = vld [vmem:[#allocation4 + $0x70] sm:$0xff]  ;;  %v301_v20 = vld [vmem:[#allocation4 + $0x1f8] sm:$0xff] }
  0x23   :  { %311 = vmatpush.msra.mxu1 %v262_v46  ;;  %337 = vmatpush.msra.mxu2 %v263_v47  ;;  %668 = vtanh.f32 %v88_v13  ;;  %v248_v22 = vld [vmem:[#allocation4 + $0x50] sm:$0xff]  ;;  %v297_v23 = vld [vmem:[#allocation4 + $0x1d8] sm:$0xff]  ;;  %v65_v32 = vld [vmem:[%s962_s1] sm:$0x7] }
  0x24   :  { %153 = vperm.xlu1 %659, %v140_v45   ;;  %360 = vmatpush.msra.mxu3 %v276_v48  ;;  %v77_v24 = vld [vmem:[%s963_s2 + $0x10] sm:$0xff]  ;;  %v293_v27 = vld [vmem:[#allocation4 + $0x1b8] sm:$0xff]  ;;  %670 = vtanh.f32 %v87_v25  ;;  %v67_v35 = vrot.slane %v65_v32, 1 }
  0x25   :  { %209 = vmatpush.msra.mxu0 %v188_v50  ;;  %312 = vmatpush.msra.mxu1 %v258_v51  ;;  %v244_v26 = vld [vmem:[#allocation4 + $0x30] sm:$0xff]  ;;  %v86_v28 = vadd.f32 %v80_v21, %v77_v24  ;;  %v289_v30 = vld [vmem:[#allocation4 + $0x198] sm:$0xff]  ;;  %v99_v50 = vperm.slane %v65_v32, 0 }
  0x26   :  { %126 = vperm.xlu0 %658, %v113_v49   ;;  %338 = vmatpush.msra.mxu2 %v259_v52  ;;  %v240_v29 = vld [vmem:[#allocation4 + $0x10] sm:$0xff]  ;;  %v285_v34 = vld [vmem:[#allocation4 + $0x178] sm:$0xff]  ;;  %v100_v41 = vperm.slane %v67_v35, 0 }
  0x27   :  { %174 = vperm.xlu2 %660, %v667_v38   ;;  %361 = vmatpush.msra.mxu3 %v272_v53  ;;  %v89_v33 = vmul.f32 0.5, %v86_v28  ;;  %v281_v37 = vld [vmem:[#allocation4 + $0x158] sm:$0xff]  ;;  %v68_v53 = vrot.slane %v65_v32, 2 }
  0x28   :  { %210 = vmatpush.msra.mxu0 %v187_v58  ;;  %313 = vmatpush.msra.mxu1 %v254_v59  ;;  %v277_v39 = vld [vmem:[#allocation4 + $0x138] sm:$0xff] }
  0x29   :  { %339 = vmatpush.msra.mxu2 %v255_v60  ;;  %362 = vmatpush.msra.mxu3 %v268_v61  ;;  %v669_v31 = vpop.eup %668  ;;  %672 = vtanh.f32 %v89_v33  ;;  %v273_v42 = vld [vmem:[#allocation4 + $0x118] sm:$0xff] }
  0x2a   :  { %211 = vmatpush.msra.mxu0 %v186_v63  ;;  %314 = vmatpush.msra.mxu1 %v250_v0  ;;  %v94_v36 = vadd.f32 1.0, %v669_v31  ;;  %v671_v38 = vpop.eup %670  ;;  %v269_v44 = vld [vmem:[#allocation4 + $0xf8] sm:$0xff]  ;;  %v101_v0 = vperm.slane %v68_v53, 0 }
  0x2b   :  { %340 = vmatpush.msra.mxu2 %v251_v1  ;;  %363 = vmatpush.msra.mxu3 %v264_v3  ;;  %v93_v43 = vadd.f32 1.0, %v671_v38  ;;  %v265_v45 = vld [vmem:[#allocation4 + $0xd8] sm:$0xff] }
  0x2c   :  { %212 = vmatpush.msra.mxu0 %v185_v4  ;;  %315 = vmatpush.msra.mxu1 %v246_v5  ;;  %v97_v40 = vmul.f32 0.5, %v94_v36  ;;  %v261_v48 = vld [vmem:[#allocation4 + $0xb8] sm:$0xff] }
  0x2d   :  { %341 = vmatpush.msra.mxu2 %v247_v7  ;;  %364 = vmatpush.msra.mxu3 %v260_v8  ;;  %v96_v49 = vmul.f32 0.5, %v93_v43  ;;  %v257_v51 = vld [vmem:[#allocation4 + $0x98] sm:$0xff] }
  0x2e   :  { %213 = vmatpush.msra.mxu0 %v184_v9  ;;  %316 = vmatpush.msra.mxu1 %v242_v10  ;;  %v106_v46 = vmul.f32 %v100_v41, %v97_v40  ;;  %v253_v59 = vld [vmem:[#allocation4 + $0x78] sm:$0xff] }
  0x2f   :  { %342 = vmatpush.msra.mxu2 %v243_v11  ;;  %365 = vmatpush.msra.mxu3 %v256_v12  ;;  %v673_v47 = vpop.eup %672  ;;  %v105_v56 = vmul.f32 %v99_v50, %v96_v49  ;;  %v249_v60 = vld [vmem:[#allocation4 + $0x58] sm:$0xff] }
  0x30   :  { %214 = vmatpush.msra.mxu0 %v183_v16  ;;  %317 = vmatpush.msra.mxu1 %v238_v17  ;;  %v133_v52 = vsub.f32 0.0, %v106_v46  ;;  %v95_v54 = vadd.f32 1.0, %v673_v47  ;;  %v245_v1 = vld [vmem:[#allocation4 + $0x38] sm:$0xff]  ;;  %v109_v2 = vmax.f32 %v106_v46, 0.0 }
  0x31   :  { %343 = vmatpush.msra.mxu2 %v239_v18  ;;  %366 = vmatpush.msra.mxu3 %v252_v19  ;;  %v132_v62 = vsub.f32 0.0, %v105_v56  ;;  %v241_v3 = vld [vmem:[#allocation4 + $0x18] sm:$0xff]  ;;  %v108_v5 = vmax.f32 %v105_v56, 0.0 }
  0x32   :  { %380 = vmatpush.msrb.mxu0 %v301_v20  ;;  %619 = vmatpush.msrb.mxu1 %v301_v20  ;;  %v136_v61 = vmax.f32 %v133_v52, 0.0  ;;  %v98_v63 = vmul.f32 0.5, %v95_v54 }
  0x33   :  { %620 = vmatpush.msrb.mxu2 %v301_v20  ;;  %367 = vmatpush.msra.mxu3 %v248_v22  ;;  %v135_v6 = vmax.f32 %v132_v62, 0.0 }
  0x34   :  { %381 = vmatpush.msrb.mxu0 %v297_v23  ;;  %621 = vmatpush.msrb.mxu1 %v297_v23  ;;  %v107_v7 = vmul.f32 %v101_v0, %v98_v63 }
  0x35   :  { %622 = vmatpush.msrb.mxu2 %v297_v23  ;;  %368 = vmatpush.msra.mxu3 %v244_v26 }
  0x36   :  { %382 = vmatpush.msrb.mxu0 %v293_v27  ;;  %623 = vmatpush.msrb.mxu1 %v293_v27  ;;  %v134_v14 = vsub.f32 0.0, %v107_v7  ;;  %v110_v20 = vmax.f32 %v107_v7, 0.0 }
  0x37   :  { %624 = vmatpush.msrb.mxu2 %v293_v27  ;;  %369 = vmatpush.msra.mxu3 %v240_v29 }
  0x38   :  { %383 = vmatpush.msrb.mxu0 %v289_v30  ;;  %625 = vmatpush.msrb.mxu1 %v289_v30  ;;  %v137_v19 = vmax.f32 %v134_v14, 0.0 }
  0x39   :  { %626 = vmatpush.msrb.mxu2 %v289_v30 }
  0x3a   :  { %384 = vmatpush.msrb.mxu0 %v285_v34  ;;  %627 = vmatpush.msrb.mxu1 %v285_v34 }
  0x3b   :  { %628 = vmatpush.msrb.mxu2 %v285_v34 }
  0x3c   :  { %385 = vmatpush.msrb.mxu0 %v281_v37  ;;  %629 = vmatpush.msrb.mxu1 %v281_v37 }
  0x3d   :  { %630 = vmatpush.msrb.mxu2 %v281_v37 }
  0x3e   :  { %386 = vmatpush.msrb.mxu0 %v277_v39  ;;  %631 = vmatpush.msrb.mxu1 %v277_v39 }
  0x3f   :  { %632 = vmatpush.msrb.mxu2 %v277_v39 }
  0x40   :  { %387 = vmatpush.msrb.mxu0 %v273_v42  ;;  %633 = vmatpush.msrb.mxu1 %v273_v42 }
  0x41   :  { %634 = vmatpush.msrb.mxu2 %v273_v42 }
  0x42   :  { %388 = vmatpush.msrb.mxu0 %v269_v44  ;;  %635 = vmatpush.msrb.mxu1 %v269_v44 }
  0x43   :  { %636 = vmatpush.msrb.mxu2 %v269_v44 }
  0x44   :  { %389 = vmatpush.msrb.mxu0 %v265_v45  ;;  %637 = vmatpush.msrb.mxu1 %v265_v45 }
  0x45   :  { %638 = vmatpush.msrb.mxu2 %v265_v45 }
  0x46   :  { %390 = vmatpush.msrb.mxu0 %v261_v48  ;;  %639 = vmatpush.msrb.mxu1 %v261_v48 }
  0x47   :  { %640 = vmatpush.msrb.mxu2 %v261_v48 }
  0x48   :  { %391 = vmatpush.msrb.mxu0 %v257_v51  ;;  %641 = vmatpush.msrb.mxu1 %v257_v51 }
  0x49   :  { %642 = vmatpush.msrb.mxu2 %v257_v51 }
  0x4a   :  { %392 = vmatpush.msrb.mxu0 %v253_v59  ;;  %643 = vmatpush.msrb.mxu1 %v253_v59 }
  0x4b   :  { %644 = vmatpush.msrb.mxu2 %v253_v59 }
  0x4c   :  { %393 = vmatpush.msrb.mxu0 %v249_v60  ;;  %645 = vmatpush.msrb.mxu1 %v249_v60 }
  0x4d   :  { %646 = vmatpush.msrb.mxu2 %v249_v60 }
  0x4e   :  { %394 = vmatpush.msrb.mxu0 %v245_v1  ;;  %647 = vmatpush.msrb.mxu1 %v245_v1 }
  0x4f   :  { %648 = vmatpush.msrb.mxu2 %v245_v1 }
  0x50   :  { %395 = vmatpush.msrb.mxu0 %v241_v3  ;;  %649 = vmatpush.msrb.mxu1 %v241_v3 }
  0x51   :  { %650 = vmatpush.msrb.mxu2 %v241_v3 }
  0x71   :  { %v149_v57 = vpop.permute.xlu2 %148 }
  0x72   :  { %v157_v4 = vmul.f32 %v149_v57, %v136_v61 }
  0x79   :  { %v170_v15 = vpop.permute.xlu2 %169 }
  0x81   :  { %v175_v26 = vpop.permute.xlu2 %174 }
  0x86   :  { %v165_v55 = vpop.permute.xlu1 %164 }
  0x88   :  { %v117_v58 = vpop.permute.xlu0 %116 }
  0x89   :  { %v129_v11 = vmul.f32 %v117_v58, %v108_v5 }
  0x8e   :  { %v122_v8 = vpop.permute.xlu1 %121 }
  0x8f   :  { %v130_v9 = vmul.f32 %v122_v8, %v109_v2 }
  0x90   :  { %v144_v10 = vpop.permute.xlu0 %143 }
  0x91   :  { %v160_v12 = vsub.f32 %v130_v9, %v157_v4  ;;  %v156_v13 = vmul.f32 %v144_v10, %v135_v6 }
  0x93   :  { %v178_v16 = vadd.f32 %v170_v15, %v160_v12  ;;  %v159_v17 = vsub.f32 %v129_v11, %v156_v13 }
  0x95   :  { %181 = vst [vmem:[%s968_s7 + $0x8] sm:$0xff] %v178_v16  ;;  %v177_v18 = vadd.f32 %v165_v55, %v159_v17 }
  0x96   :  { %v154_v21 = vpop.permute.xlu1 %153 }
  0x97   :  { %180 = vst [vmem:[%s968_s7] sm:$0xff] %v177_v18  ;;  %215 = vmatmul.f32.vlgmr.msra.gmra.mxu0 %v177_v18  ;;  %318 = vmatmul.f32.vlgmr.msra.gmra.mxu1 %v177_v18  ;;  %v158_v23 = vmul.f32 %v154_v21, %v137_v19 }
  0x98   :  { %344 = vmatmul.f32.vlgmr.msra.gmra.mxu2 %v177_v18  ;;  %370 = vmatmul.f32.vlgmr.msra.gmra.mxu3 %v177_v18  ;;  %v127_v22 = vpop.permute.xlu0 %126 }
  0x99   :  { %v131_v24 = vmul.f32 %v127_v22, %v110_v20 }
  0x9b   :  { %v161_v25 = vsub.f32 %v131_v24, %v158_v23 }
  0x9d   :  { %v179_v27 = vadd.f32 %v175_v26, %v161_v25 }
  0x9f   :  { %182 = vst [vmem:[%s968_s7 + $0x10] sm:$0xff] %v179_v27  ;;  %218 = vmatmul.f32.gmra.mxu0 %v178_v16  ;;  %321 = vmatmul.f32.gmra.mxu1 %v178_v16 }
  0xa0   :  { %347 = vmatmul.f32.gmra.mxu2 %v178_v16  ;;  %373 = vmatmul.f32.gmra.mxu3 %v178_v16 }
  0xa7   :  { %221 = vmatmul.f32.gmra.mxu0 %v179_v27  ;;  %324 = vmatmul.f32.gmra.mxu1 %v179_v27 }
  0xa8   :  { %350 = vmatmul.f32.gmra.mxu2 %v179_v27  ;;  %376 = vmatmul.f32.gmra.mxu3 %v179_v27 }
  0xaf   :  { %396 = vmatmul.f32.vlgmr.msrb.gmra.mxu0 %v177_v18  ;;  %399 = vmatmul.f32.vlgmr.msrb.gmra.mxu1 %v178_v16 }
  0xb0   :  { %402 = vmatmul.f32.vlgmr.msrb.gmra.mxu2 %v179_v27 }
 0x114   :  { %v216_v28 = vpop.f32.mrf.mxu0  ;;  %v319_v29 = vpop.f32.mrf.mxu1 }
 0x115   :  { %v225_v30 = vmul.f32 %v216_v28, %v216_v28 }
 0x117   :  { %228 = vadd.xlane.f32.xlu0 %v225_v30 }
 0x11b   :  { %v345_v31 = vpop.f32.mrf.mxu2  ;;  %v371_v32 = vpop.f32.mrf.mxu3 }
 0x11c   :  { %v219_v33 = vpop.f32.mrf.mxu0  ;;  %v322_v34 = vpop.f32.mrf.mxu1  ;;  %v844_v43 = vsub.f32 %v345_v31, %v319_v29  ;;  %v846_v44 = vsub.f32 %v371_v32, %v319_v29 }
 0x11d   :  { %v226_v35 = vmul.f32 %v219_v33, %v219_v33 }
 0x11e   :  { %v415_v49 = vmul.f32 %v844_v43, %v844_v43  ;;  %v433_v50 = vmul.f32 %v846_v44, %v846_v44  ;;  %v469_v17 = vmul.f32 %v846_v44, %v844_v43 }
 0x11f   :  { %230 = vadd.xlane.f32.xlu1 %v226_v35 }
 0x123   :  { %v348_v36 = vpop.f32.mrf.mxu2  ;;  %v374_v37 = vpop.f32.mrf.mxu3 }
 0x124   :  { %v222_v38 = vpop.f32.mrf.mxu0  ;;  %v325_v39 = vpop.f32.mrf.mxu1  ;;  %v840_v41 = vsub.f32 %v348_v36, %v322_v34  ;;  %v842_v42 = vsub.f32 %v374_v37, %v322_v34 }
 0x125   :  { %v227_v40 = vmul.f32 %v222_v38, %v222_v38 }
 0x126   :  { %v416_v45 = vmul.f32 %v840_v41, %v840_v41  ;;  %v434_v46 = vmul.f32 %v842_v42, %v842_v42  ;;  %v470_v12 = vmul.f32 %v842_v42, %v840_v41 }
 0x127   :  { %232 = vadd.xlane.f32.xlu2 %v227_v40 }
 0x128   :  { %v417_v53 = vadd.f32 %v416_v45, %v415_v49  ;;  %v435_v54 = vadd.f32 %v434_v46, %v433_v50  ;;  %v471_v24 = vadd.f32 %v470_v12, %v469_v17 }
 0x12b   :  { %v351_v47 = vpop.f32.mrf.mxu2  ;;  %v377_v48 = vpop.f32.mrf.mxu3 }
 0x12c   :  { %v856_v51 = vsub.f32 %v351_v47, %v325_v39  ;;  %v858_v52 = vsub.f32 %v377_v48, %v325_v39  ;;  %v397_v57 = vpop.f32.mrf.mxu0  ;;  %v400_v58 = vpop.f32.mrf.mxu1 }
 0x12d   :  { %v864_v61 = vsub.f32 %v397_v57, %v319_v29  ;;  %v866_v62 = vsub.f32 %v400_v58, %v322_v34 }
 0x12e   :  { %v418_v55 = vmul.f32 %v856_v51, %v856_v51  ;;  %v436_v56 = vmul.f32 %v858_v52, %v858_v52  ;;  %v472_v19 = vmul.f32 %v858_v52, %v856_v51 }
 0x12f   :  { %v451_v2 = vmul.f32 %v864_v61, %v864_v61  ;;  %v452_v3 = vmul.f32 %v866_v62, %v866_v62  ;;  %v474_v20 = vmul.f32 %v864_v61, %v844_v43  ;;  %v475_v23 = vmul.f32 %v866_v62, %v840_v41 }
 0x130   :  { %v419_v59 = vadd.f32 %v418_v55, %v417_v53  ;;  %v437_v60 = vadd.f32 %v436_v56, %v435_v54  ;;  %v903_v32 = vadd.f32 %v472_v19, %v471_v24 }
 0x131   :  { %v453_v5 = vadd.f32 %v452_v3, %v451_v2  ;;  %v476_v35 = vadd.f32 %v475_v23, %v474_v20 }
 0x132   :  { %v868_v63 = vadd.f32 1e-06, %v419_v59  ;;  %v870_v0 = vadd.f32 1e-06, %v437_v60 }
 0x133   :  { %v403_v1 = vpop.f32.mrf.mxu2 }
 0x134   :  { %674 = vrsqrt.f32 %v868_v63  ;;  %v879_v4 = vsub.f32 %v403_v1, %v325_v39  ;;  %v431_v25 = vand.u32 2147483648, %v868_v63  ;;  %v552_v27 = vand.u32 2147483647, %v868_v63 }
 0x135   :  { %676 = vrsqrt.f32 %v870_v0  ;;  %vm548_vm1 = vweird.f32 %v868_v63  ;;  %vm428_vm2 = vcmp.eq.f32.partialorder %v868_v63, inf  ;;  %vm430_vm3 = vcmp.eq.f32.partialorder %v868_v63, 0.0 }
 0x136   :  { %678 = vrcp.f32 %v868_v63  ;;  %v454_v6 = vmul.f32 %v879_v4, %v879_v4  ;;  %v477_v30 = vmul.f32 %v879_v4, %v856_v51  ;;  %v555_v37 = vor.u32 1.1754944e-38, %v431_v25 }
 0x137   :  { %vm553_vm5 = vcmp.eq.f32.partialorder %v552_v27, 8.507059e+37  ;;  %vm446_vm6 = vcmp.eq.f32.partialorder %v870_v0, inf  ;;  %v449_v50 = vand.u32 2147483648, %v870_v0  ;;  %vm448_vm7 = vcmp.eq.f32.partialorder %v870_v0, 0.0 }
 0x138   :  { %v455_v10 = vadd.f32 %v454_v6, %v453_v5  ;;  %v909_v45 = vadd.f32 %v477_v30, %v476_v35 }
 0x13a   :  { %v675_v7 = vpop.eup %674  ;;  %v888_v16 = vadd.f32 1e-06, %v455_v10 }
 0x13b   :  { %v677_v8 = vpop.eup %676  ;;  %v422_v9 = vmul.f32 %v675_v7, %v868_v63 }
 0x13c   :  { %v679_v11 = vpop.eup %678  ;;  %v440_v13 = vmul.f32 %v677_v8, %v870_v0  ;;  %680 = vrsqrt.f32 %v888_v16  ;;  %vm464_vm8 = vcmp.eq.f32.partialorder %v888_v16, inf  ;;  %vm466_vm9 = vcmp.eq.f32.partialorder %v888_v16, 0.0 }
 0x13d   :  { %v423_v14 = vmul.f32 %v675_v7, %v422_v9  ;;  %v544_v15 = vmul.f32 %v679_v11, %v868_v63  ;;  %vm549_vm0 = vweird.f32 %v679_v11 }
 0x13e   :  { %v441_v18 = vmul.f32 %v677_v8, %v440_v13  ;;  %vm550_vm4 = vmor %vm548_vm1, %vm549_vm0 }
 0x13f   :  { %v424_v21 = vmul.f32 0.5, %v423_v14  ;;  %v545_v22 = vsub.f32 1.0, %v544_v15 }
 0x140   :  { %v442_v26 = vmul.f32 0.5, %v441_v18 }
 0x141   :  { %v425_v28 = vsub.f32 1.5, %v424_v21  ;;  %v546_v29 = vmul.f32 %v679_v11, %v545_v22 }
 0x142   :  { %v443_v31 = vsub.f32 1.5, %v442_v26  ;;  %v681_v38 = vpop.eup %680 }
 0x143   :  { %v426_v33 = vmul.f32 %v675_v7, %v425_v28  ;;  %v547_v34 = vadd.f32 %v679_v11, %v546_v29  ;;  %v458_v48 = vmul.f32 %v681_v38, %v888_v16 }
 0x144   :  { %v444_v36 = vmul.f32 %v677_v8, %v443_v31 }
 0x145   :  { %v427_v39 = vmul.f32 %v426_v33, %v868_v63  ;;  %v551_v40 = vsel %vm550_vm4, %v679_v11, %v547_v34  ;;  %v459_v57 = vmul.f32 %v681_v38, %v458_v48 }
 0x146   :  { %v445_v46 = vmul.f32 %v444_v36, %v870_v0  ;;  %v556_v47 = vsel %vm553_vm5, %v555_v37, %v551_v40 }
 0x147   :  { %v429_v49 = vsel %vm428_vm2, %v868_v63, %v427_v39  ;;  %v557_v53 = vmul.f32 %v556_v47, %v903_v32  ;;  %v564_v54 = vmul.f32 %v556_v47, %v909_v45  ;;  %v460_v3 = vmul.f32 0.5, %v459_v57 }
 0x148   :  { %v432_v55 = vsel %vm430_vm3, %v431_v25, %v429_v49  ;;  %v447_v56 = vsel %vm446_vm6, %v870_v0, %v445_v46 }
 0x149   :  { %v922_v58 = vsel %vm448_vm7, %v449_v50, %v447_v56  ;;  %v558_v59 = vmul.f32 %v557_v53, %v844_v43  ;;  %v559_v60 = vmul.f32 %v557_v53, %v840_v41  ;;  %v560_v1 = vmul.f32 %v557_v53, %v856_v51 }
 0x14a   :  { %v479_v2 = vmul.f32 %v922_v58, %v432_v55  ;;  %v565_v5 = vmul.f32 %v564_v54, %v844_v43  ;;  %v566_v63 = vmul.f32 %v564_v54, %v840_v41  ;;  %v567_v0 = vmul.f32 %v564_v54, %v856_v51 }
 0x14b   :  { %v563_v6 = vsub.f32 %v858_v52, %v560_v1  ;;  %v561_v7 = vsub.f32 %v846_v44, %v558_v59  ;;  %v562_v8 = vsub.f32 %v842_v42, %v559_v60  ;;  %v461_v10 = vsub.f32 1.5, %v460_v3 }
 0x14c   :  { %v480_v9 = vadd.f32 1e-06, %v479_v2  ;;  %v568_v11 = vsub.f32 %v864_v61, %v565_v5  ;;  %v569_v12 = vsub.f32 %v866_v62, %v566_v63  ;;  %v570_v13 = vsub.f32 %v879_v4, %v567_v0 }
 0x14d   :  { %v462_v43 = vmul.f32 %v681_v38, %v461_v10  ;;  %v467_v42 = vand.u32 2147483648, %v888_v16 }
 0x14e   :  { %682 = vrcp.f32 %v480_v9  ;;  %v574_v14 = vmul.f32 %v570_v13, %v563_v6  ;;  %v571_v41 = vmul.f32 %v568_v11, %v561_v7  ;;  %v572_v15 = vmul.f32 %v569_v12, %v562_v8 }
 0x14f   :  { %v463_v52 = vmul.f32 %v462_v43, %v888_v16  ;;  %v492_v21 = vand.u32 2147483648, %v480_v9  ;;  %v490_v23 = vand.u32 2147483647, %v480_v9  ;;  %vm486_vm11 = vweird.f32 %v480_v9 }
 0x150   :  { %v573_v51 = vadd.f32 %v572_v15, %v571_v41 }
 0x151   :  { %v465_v44 = vsel %vm464_vm8, %v888_v16, %v463_v52  ;;  %v493_v25 = vor.u32 1.1754944e-38, %v492_v21  ;;  %vm491_vm13 = vcmp.eq.f32.partialorder %v490_v23, 8.507059e+37 }
 0x152   :  { %v942_v61 = vadd.f32 %v574_v14, %v573_v51  ;;  %v944_v4 = vsel %vm466_vm9, %v467_v42, %v465_v44 }
 0x153   :  { %v496_v18 = vmul.f32 %v944_v4, %v432_v55 }
 0x154   :  { %v683_v62 = vpop.eup %682 }
 0x155   :  { %v482_v17 = vmul.f32 %v683_v62, %v480_v9  ;;  %v497_v20 = vadd.f32 1e-06, %v496_v18  ;;  %vm487_vm10 = vweird.f32 %v683_v62 }
 0x156   :  { %vm488_vm12 = vmor %vm486_vm11, %vm487_vm10  ;;  %vm236_vm10 = vcmask 7168  }
 0x157   :  { %v483_v19 = vsub.f32 1.0, %v482_v17  ;;  %684 = vrcp.f32 %v497_v20  ;;  %v509_v34 = vand.u32 2147483648, %v497_v20  ;;  %v507_v36 = vand.u32 2147483647, %v497_v20 }
 0x158   :  { %vm503_vm15 = vweird.f32 %v497_v20 }
 0x159   :  { %v484_v22 = vmul.f32 %v683_v62, %v483_v19  ;;  %v510_v39 = vor.u32 1.1754944e-38, %v509_v34  ;;  %vm508_vm1 = vcmp.eq.f32.partialorder %v507_v36, 8.507059e+37 }
 0x15b   :  { %v485_v24 = vadd.f32 %v683_v62, %v484_v22 }
 0x15d   :  { %v489_v16 = vsel %vm488_vm12, %v683_v62, %v485_v24  ;;  %v685_v27 = vpop.eup %684  ;;  %v661_v24 = vld [vmem:[%s967_s6] ss:$0 sm:$0xff] }
 0x15e   :  { %v494_v26 = vsel %vm491_vm13, %v493_v25, %v489_v16  ;;  %v499_v29 = vmul.f32 %v685_v27, %v497_v20  ;;  %vm504_vm14 = vweird.f32 %v685_v27 }
 0x15f   :  { %v495_v28 = vmul.f32 %v494_v26, %v903_v32  ;;  %vm505_vm0 = vmor %vm503_vm15, %vm504_vm14 }
 0x160   :  { %v500_v31 = vsub.f32 1.0, %v499_v29 }
 0x161   :  { %v513_v30 = vmul.f32 %v495_v28, %v495_v28 }
 0x162   :  { %v501_v35 = vmul.f32 %v685_v27, %v500_v31 }
 0x163   :  { %v514_v33 = vsub.f32 1.0, %v513_v30 }
 0x164   :  { %v502_v38 = vadd.f32 %v685_v27, %v501_v35 }
 0x165   :  { %v515_v37 = vmax.f32 %v514_v33, 0.0 }
 0x166   :  { %v506_v40 = vsel %vm505_vm0, %v685_v27, %v502_v38 }
 0x167   :  { %686 = vrsqrt.f32 %v515_v37  ;;  %v511_v46 = vsel %vm508_vm1, %v510_v39, %v506_v40  ;;  %vm523_vm2 = vcmp.eq.f32.partialorder %v515_v37, inf  ;;  %v526_v5 = vand.u32 2147483648, %v515_v37 }
 0x168   :  { %v512_v47 = vmul.f32 %v511_v46, %v909_v45  ;;  %vm525_vm3 = vcmp.eq.f32.partialorder %v515_v37, 0.0 }
 0x16a   :  { %v528_v32 = vmul.f32 %v512_v47, %v512_v47 }
 0x16c   :  { %v529_v50 = vsub.f32 1.0, %v528_v32 }
 0x16d   :  { %v687_v48 = vpop.eup %686 }
 0x16e   :  { %v517_v49 = vmul.f32 %v687_v48, %v515_v37  ;;  %v530_v54 = vmax.f32 %v529_v50, 0.0 }
 0x170   :  { %v518_v53 = vmul.f32 %v687_v48, %v517_v49  ;;  %688 = vrsqrt.f32 %v530_v54  ;;  %vm538_vm4 = vcmp.eq.f32.partialorder %v530_v54, inf  ;;  %v541_v9 = vand.u32 2147483648, %v530_v54 }
 0x171   :  { %vm540_vm5 = vcmp.eq.f32.partialorder %v530_v54, 0.0 }
 0x172   :  { %v519_v55 = vmul.f32 0.5, %v518_v53 }
 0x174   :  { %v520_v56 = vsub.f32 1.5, %v519_v55 }
 0x176   :  { %v521_v57 = vmul.f32 %v687_v48, %v520_v56  ;;  %v689_v59 = vpop.eup %688 }
 0x177   :  { %v532_v1 = vmul.f32 %v689_v59, %v530_v54 }
 0x178   :  { %v522_v60 = vmul.f32 %v521_v57, %v515_v37 }
 0x179   :  { %v533_v3 = vmul.f32 %v689_v59, %v532_v1 }
 0x17a   :  { %v524_v2 = vsel %vm523_vm2, %v515_v37, %v522_v60 }
 0x17b   :  { %v534_v63 = vmul.f32 0.5, %v533_v3  ;;  %v527_v45 = vsel %vm525_vm3, %v526_v5, %v524_v2 }
 0x17c   :  { %v576_v0 = vmul.f32 %v527_v45, %v922_v58 }
 0x17d   :  { %v535_v6 = vsub.f32 1.5, %v534_v63 }
 0x17e   :  { %v577_v11 = vmul.f32 %v576_v0, %v944_v4 }
 0x17f   :  { %v536_v7 = vmul.f32 %v689_v59, %v535_v6 }
 0x181   :  { %v537_v8 = vmul.f32 %v536_v7, %v530_v54 }
 0x183   :  { %v539_v10 = vsel %vm538_vm4, %v530_v54, %v537_v8 }
 0x184   :  { %v542_v12 = vsel %vm540_vm5, %v541_v9, %v539_v10 }
 0x185   :  { %v578_v13 = vmul.f32 %v577_v11, %v542_v12 }
 0x187   :  { %v579_v43 = vadd.f32 1e-06, %v578_v13 }
 0x189   :  { %690 = vrcp.f32 %v579_v43  ;;  %v591_v52 = vand.u32 2147483648, %v579_v43  ;;  %v589_v58 = vand.u32 2147483647, %v579_v43  ;;  %vm585_vm7 = vweird.f32 %v579_v43 }
 0x18a   :  { %v229_v44 = vpop.xlane.xlu0 %228 }
 0x18b   :  { %v592_v18 = vor.u32 1.1754944e-38, %v591_v52  ;;  %vm590_vm9 = vcmp.eq.f32.partialorder %v589_v58, 8.507059e+37 }
 0x18f   :  { %v691_v14 = vpop.eup %690 }
 0x190   :  { %v581_v41 = vmul.f32 %v691_v14, %v579_v43  ;;  %vm586_vm6 = vweird.f32 %v691_v14 }
 0x191   :  { %vm587_vm8 = vmor %vm585_vm7, %vm586_vm6 }
 0x192   :  { %v582_v15 = vsub.f32 1.0, %v581_v41  ;;  %v231_v51 = vpop.xlane.xlu1 %230 }
 0x193   :  { %v234_v17 = vadd.f32 %v231_v51, %v229_v44 }
 0x194   :  { %v583_v42 = vmul.f32 %v691_v14, %v582_v15 }
 0x196   :  { %v584_v62 = vadd.f32 %v691_v14, %v583_v42 }
 0x198   :  { %v588_v4 = vsel %vm587_vm8, %v691_v14, %v584_v62 }
 0x199   :  { %v593_v21 = vsel %vm590_vm9, %v592_v18, %v588_v4 }
 0x19a   :  { %v233_v19 = vpop.xlane.xlu2 %232  ;;  %v594_v22 = vmul.f32 %v593_v21, %v942_v61 }
 0x19b   :  { %v235_v20 = vadd.f32 %v234_v17, %v233_v19 }
 0x19c   :  { %v595_v23 = vadd.f32 1.0, %v594_v22 }
 0x19d   :  { %237 = vst.msk [vmem:[%s969_s8] sm:$0xff] %vm236_vm10, %v235_v20 }
 0x19e   :  { %v596_v25 = vmul.f32 %v595_v23, %v595_v23 }
 0x1a0   :  { %v601_v16 = vmul.f32 %v661_v24, %v596_v25 }
 0x1a2   :  { %602 = vadd.xlane.f32.xlu2 %v601_v16 }
 0x215   :  { %v603_v26 = vpop.xlane.xlu2 %602 }
 0x216   :  { %604 = vst.msk [vmem:[%s970_s9] sm:$0xff] %vm236_vm10, %v603_v26 }
 0x217   :  { %617 = vsyncpa [#allocation3], 1 }
 0x218   :  { %618 = vsyncpa [#allocation5], 1 }

</bundles_post_ra>
